<compile_context>
chip_gen: v7x
topology: tpu7x:2x2x1
jax: 0.10.0
libtpu: 0.0.40
codegen_flags: <defaults>
</compile_context>

<pallas_src>
import functools

import jax
import jax.numpy as jnp
from jax.experimental import pallas as pl
from jax.experimental.pallas import tpu as pltpu

_LANE = 128
_SUBLANE = 8


def _round_up(x: int, m: int) -> int:
    return ((x + m - 1) // m) * m


def _edm_kernel(tgt_ref, est_ref, out_ref, *scratch,
                n_valid, npad, b_total, fold_final):
    """One batch block: cumsum(est - tgt) along bins, sum of squares (or full loss)."""
    i = pl.program_id(0)

    d = est_ref[...].astype(jnp.float32) - tgt_ref[...].astype(jnp.float32)  # (tb, N)
    tb = d.shape[0]

    # Zero rows past the true batch size in a (possible) partial last block.
    if b_total % tb != 0:
        row = jax.lax.broadcasted_iota(jnp.int32, (tb, 1), 0)
        d = jnp.where(row < (b_total - i * tb), d, 0.0)

    if npad != n_valid:
        # Widen to a lane-aligned, zero-filled slab entirely in VMEM
        # (no HBM padding traffic; padded lanes are genuinely zero).
        wide_ref = scratch[0]
        wide_ref[...] = jnp.zeros_like(wide_ref)
        wide_ref[:, :n_valid] = d
        x = wide_ref[...]                                   # (tb, npad)
    else:
        x = d

    col = jax.lax.broadcasted_iota(jnp.int32, (1, npad), 1)

    # Hillis-Steele inclusive prefix scan along lanes: x = cumsum(d, axis=1).
    shift = 1
    while shift < n_valid:
        rolled = pltpu.roll(x, shift, axis=1)
        if npad >= n_valid + 2 * shift - 1:
            # Wrapped-in lanes are guaranteed-zero padding at this step: no mask.
            x = x + rolled
        else:
            x = x + jnp.where(col >= shift, rolled, 0.0)
        shift *= 2

    sq = x * x
    if npad != n_valid:
        sq = jnp.where(col < n_valid, sq, 0.0)              # padded bins don't count

    if fold_final:
        # Single-block grid: emit the final scalar loss directly (VMEM (1,1) out).
        total = jnp.sum(jnp.sum(sq, axis=1, keepdims=True), axis=0, keepdims=True)
        out_ref[...] = jnp.sqrt(total * jnp.float32(1.0 / (b_total * n_valid)))
    else:
        # Partial sum of squared CDF differences for this block (SMEM scalar).
        out_ref[0, 0] = jnp.sum(sq)


def edm_loss(p_target: jax.Array, p_estimate: jax.Array, *,
             block_b: int = 1024, single_block_max: int = 256) -> jax.Array:
    assert p_target.shape == p_estimate.shape
    assert p_target.ndim == 2
    B, N = p_target.shape

    npad = _round_up(N, _LANE)

    # Batch tiling:
    #  * small B (common SPAQ case): one block, final reduce+sqrt folded in-kernel.
    #  * large B: >= 2 balanced blocks (keeps both v7x TensorCores busy) of at
    #    most ~block_b rows each; partial last block is masked in-kernel.
    if B <= single_block_max:
        tb = B
    else:
        nblocks = max(2, pl.cdiv(B, block_b))
        tb = min(B, _round_up(pl.cdiv(B, nblocks), _SUBLANE))
    grid_b = pl.cdiv(B, tb)
    fold_final = grid_b == 1

    kernel = functools.partial(
        _edm_kernel, n_valid=N, npad=npad, b_total=B, fold_final=fold_final)

    scratch_shapes = []
    if npad != N:
        scratch_shapes.append(pltpu.VMEM((tb, npad), jnp.float32))

    if fold_final:
        out_shape = jax.ShapeDtypeStruct((1, 1), jnp.float32)
        out_specs = pl.BlockSpec((1, 1), lambda i: (0, 0))
    else:
        out_shape = jax.ShapeDtypeStruct((grid_b, 1), jnp.float32)
        out_specs = pl.BlockSpec((1, 1), lambda i: (i, 0), memory_space=pltpu.SMEM)

    itemsize = p_target.dtype.itemsize
    # Working set: 2 inputs x 2 pipeline buffers (unpadded) + the widened f32 scratch.
    block_bytes = 2 * 2 * tb * N * itemsize + tb * npad * 4
    vmem_limit = min(32 << 20, max(4 << 20, 4 * block_bytes))

    log2n = max(1, (N - 1).bit_length())
    cost = pl.CostEstimate(
        flops=int(B * N * (2 * log2n + 4)),
        transcendentals=1 if fold_final else 0,
        bytes_accessed=int(2 * B * N * itemsize + grid_b * 4),
    )

    out = pl.pallas_call(
        kernel,
        out_shape=out_shape,
        grid=(grid_b,),
        in_specs=[
            pl.BlockSpec((tb, N), lambda i: (i, 0)),
            pl.BlockSpec((tb, N), lambda i: (i, 0)),
        ],
        out_specs=out_specs,
        scratch_shapes=tuple(scratch_shapes),
        compiler_params=pltpu.CompilerParams(
            dimension_semantics=("parallel",),
            vmem_limit_bytes=vmem_limit,
        ),
        cost_estimate=cost,
    )(p_target, p_estimate)

    if fold_final:
        return out.reshape(())            # metadata-only reshape, no extra launch
    # Final reduction in the wrapper: divisor is the TRUE global B*N (padded
    # lanes / rows of a partial block were masked out in-kernel).
    return jnp.sqrt(jnp.sum(out) / jnp.float32(B * N))


def edm_loss_ref(p_target, p_estimate):
    cdf_t = jnp.cumsum(p_target.astype(jnp.float32), axis=1)
    cdf_e = jnp.cumsum(p_estimate.astype(jnp.float32), axis=1)
    diff = cdf_e - cdf_t
    return jnp.sqrt(jnp.mean(jnp.abs(diff) ** 2))


if __name__ == "__main__":
    key = jax.random.PRNGKey(0)
    k1, k2, k3, k4, k5, k6 = jax.random.split(key, 6)

    # SPAQ-style score distributions: small batch, 10 score bins.
    # Single-block path with the final mean/sqrt folded into the kernel.
    B, N = 4, 10
    p_t = jax.nn.softmax(jax.random.normal(k1, (B, N), dtype=jnp.float32), axis=1)
    p_e = jax.nn.softmax(jax.random.normal(k2, (B, N), dtype=jnp.float32), axis=1)
    loss = jax.block_until_ready(edm_loss(p_t, p_e))
    ref = jax.block_until_ready(edm_loss_ref(p_t, p_e))
    assert jnp.allclose(loss, ref, rtol=1e-5, atol=1e-6), (loss, ref)

    # Larger batch: exercises the balanced multi-block grid (>=2 blocks for the
    # v7x dual-TC split), pipelining and partial-last-block row masking.
    B2, N2 = 600, 10
    t2 = jax.nn.softmax(jax.random.normal(k3, (B2, N2), dtype=jnp.float32), axis=1)
    e2 = jax.nn.softmax(jax.random.normal(k4, (B2, N2), dtype=jnp.float32), axis=1)
    loss2 = jax.block_until_ready(edm_loss(t2, e2))
    ref2 = jax.block_until_ready(edm_loss_ref(t2, e2))
    assert jnp.allclose(loss2, ref2, rtol=1e-4, atol=1e-6), (loss2, ref2)

    # bf16 inputs accepted (halves HBM read bytes); math is still f32 in-kernel.
    B3, N3 = 16, 10
    t3 = jax.nn.softmax(jax.random.normal(k5, (B3, N3), dtype=jnp.float32), axis=1).astype(jnp.bfloat16)
    e3 = jax.nn.softmax(jax.random.normal(k6, (B3, N3), dtype=jnp.float32), axis=1).astype(jnp.bfloat16)
    loss3 = jax.block_until_ready(edm_loss(t3, e3))
    ref3 = jax.block_until_ready(edm_loss_ref(t3, e3))
    assert jnp.allclose(loss3, ref3, rtol=1e-3, atol=1e-4), (loss3, ref3)

    print("KERNEL_OK")
</pallas_src>

<mosaic_0001>
module attributes {stable_mosaic.version = 11 : i64} {
  func.func @_edm_kernel(%arg0: i32, %arg1: memref<4x10xf32, #tpu.memory_space<vmem>>, %arg2: memref<4x10xf32, #tpu.memory_space<vmem>>, %arg3: memref<1x1xf32, #tpu.memory_space<vmem>>, %arg4: memref<4x128xf32, #tpu.memory_space<vmem>>) attributes {dimension_semantics = [#tpu.dimension_semantics<parallel>], iteration_bounds = array<i64: 1>, scalar_prefetch = 0 : i64, scratch_operands = 1 : i64, tpu.core_type = #tpu.core_type<tc>, window_params = [{transform_indices = @transform_0, window_bounds = array<i64: 4, 10>}, {transform_indices = @transform_1, window_bounds = array<i64: 4, 10>}, {pipeline_mode = #tpu.pipeline_mode<synchronous>, transform_indices = @transform_2, window_bounds = array<i64: 1, 1>}]} {
    %c0 = arith.constant 0 : index
    %c0_0 = arith.constant 0 : index
    %0 = vector.load %arg2[%c0, %c0_0] : memref<4x10xf32, #tpu.memory_space<vmem>>, vector<4x10xf32>
    %c0_1 = arith.constant 0 : index
    %c0_2 = arith.constant 0 : index
    %1 = vector.load %arg1[%c0_1, %c0_2] : memref<4x10xf32, #tpu.memory_space<vmem>>, vector<4x10xf32>
    %2 = arith.subf %0, %1 : vector<4x10xf32>
    %cst = arith.constant 0.000000e+00 : f32
    %3 = vector.broadcast %cst : f32 to vector<4x128xf32>
    %c0_3 = arith.constant 0 : index
    %c0_4 = arith.constant 0 : index
    %4 = vector.load %arg4[%c0_3, %c0_4] : memref<4x128xf32, #tpu.memory_space<vmem>>, vector<4x128xf32>
    tpu.vector_store %arg4[%c0_3, %c0_4], %3 {strides = array<i32>} : memref<4x128xf32, #tpu.memory_space<vmem>>, vector<4x128xf32>,
    %c0_5 = arith.constant 0 : index
    %c0_6 = arith.constant 0 : index
    %5 = vector.load %arg4[%c0_5, %c0_6] : memref<4x128xf32, #tpu.memory_space<vmem>>, vector<4x10xf32>
    tpu.vector_store %arg4[%c0_5, %c0_6], %2 {strides = array<i32>} : memref<4x128xf32, #tpu.memory_space<vmem>>, vector<4x10xf32>,
    %c0_7 = arith.constant 0 : index
    %c0_8 = arith.constant 0 : index
    %6 = vector.load %arg4[%c0_7, %c0_8] : memref<4x128xf32, #tpu.memory_space<vmem>>, vector<4x128xf32>
    %7 = tpu.iota {dimensions = array<i32: 1>} : vector<1x128xi32>
    %c1_i32 = arith.constant 1 : i32
    %8 = tpu.dynamic_rotate %6 by %c1_i32 dim 1 : vector<4x128xf32>, i32 -> vector<4x128xf32>
    %9 = arith.addf %6, %8 : vector<4x128xf32>
    %c2_i32 = arith.constant 2 : i32
    %10 = tpu.dynamic_rotate %9 by %c2_i32 dim 1 : vector<4x128xf32>, i32 -> vector<4x128xf32>
    %11 = arith.addf %9, %10 : vector<4x128xf32>
    %c4_i32 = arith.constant 4 : i32
    %12 = tpu.dynamic_rotate %11 by %c4_i32 dim 1 : vector<4x128xf32>, i32 -> vector<4x128xf32>
    %13 = arith.addf %11, %12 : vector<4x128xf32>
    %c8_i32 = arith.constant 8 : i32
    %14 = tpu.dynamic_rotate %13 by %c8_i32 dim 1 : vector<4x128xf32>, i32 -> vector<4x128xf32>
    %15 = arith.addf %13, %14 : vector<4x128xf32>
    %16 = arith.mulf %15, %15 : vector<4x128xf32>
    %c10_i32 = arith.constant 10 : i32
    %17 = vector.broadcast %c10_i32 : i32 to vector<1x128xi32>
    %18 = arith.cmpi slt, %7, %17 : vector<1x128xi32>
    %cst_9 = arith.constant 0.000000e+00 : f32
    %19 = vector.shape_cast %18 : vector<1x128xi1> to vector<1x128xi1>
    %20 = vector.broadcast %19 : vector<1x128xi1> to vector<4x128xi1>
    %21 = vector.broadcast %cst_9 : f32 to vector<4x128xf32>
    %22 = arith.select %20, %16, %21 : vector<4x128xi1>, vector<4x128xf32>
    %cst_10 = arith.constant dense<0.000000e+00> : vector<4xf32>
    %23 = vector.multi_reduction <add>, %22, %cst_10 [1] : vector<4x128xf32> to vector<4xf32>
    %24 = vector.shape_cast %23 : vector<4xf32> to vector<4x1xf32>
    %cst_11 = arith.constant dense<0.000000e+00> : vector<1xf32>
    %25 = vector.multi_reduction <add>, %24, %cst_11 [0] : vector<4x1xf32> to vector<1xf32>
    %26 = vector.shape_cast %25 : vector<1xf32> to vector<1x1xf32>
    %cst_12 = arith.constant 2.500000e-02 : f32
    %27 = vector.broadcast %cst_12 : f32 to vector<1x1xf32>
    %28 = arith.mulf %26, %27 : vector<1x1xf32>
    %29 = math.sqrt %28 : vector<1x1xf32>
    %c0_13 = arith.constant 0 : index
    %c0_14 = arith.constant 0 : index
    %30 = vector.load %arg3[%c0_13, %c0_14] : memref<1x1xf32, #tpu.memory_space<vmem>>, vector<1x1xf32>
    tpu.vector_store %arg3[%c0_13, %c0_14], %29 {strides = array<i32>} : memref<1x1xf32, #tpu.memory_space<vmem>>, vector<1x1xf32>,
    return
  }
  func.func @transform_0(%arg0: i32) -> (i32, i32) {
    %c0_i32 = arith.constant 0 : i32
    %c0_i32_0 = arith.constant 0 : i32
    return %arg0, %c0_i32 : i32, i32
  }
  func.func @transform_1(%arg0: i32) -> (i32, i32) {
    %c0_i32 = arith.constant 0 : i32
    %c0_i32_0 = arith.constant 0 : i32
    return %arg0, %c0_i32 : i32, i32
  }
  func.func @transform_2(%arg0: i32) -> (i32, i32) {
    %c0_i32 = arith.constant 0 : i32
    %c0_i32_0 = arith.constant 0 : i32
    %c0_i32_1 = arith.constant 0 : i32
    return %c0_i32, %c0_i32_0 : i32, i32
  }
}

</mosaic_0001>

<bundles_post_ra>
// kernel: tpu_custom_call.1
= control target key start
LH: loop header
LB: loop body
LE: loop exit
PB: predicated region body
PF: predicated region fallthrough
CT: control target
= control target key end

     0   :  { %7 = vsyncpa [#allocation4], 0  ;;  %s240_s0 = inlined_call_operand.hbm [shape: f32[4,10], index: 0, kind: input, shape index: {}]   ;;  %s241_s1 = inlined_call_operand.hbm [shape: f32[4,10], index: 1, kind: input, shape index: {}]   ;;  %s242_s2 = inlined_call_operand.hbm [shape: f32[1,1], index: 2, kind: output, shape index: {}]  }
   0x1   :  { %8 = vsyncpa [#allocation7], 0 }
   0x2   :  { %9 = vsyncpa [#allocation5], 0  ;;  %s181_s9 = smov [#allocation3]   ;;  %s182_s11 = smov [#allocation6]  }
   0x3   :  { %s16_s10 = sshll.u32 %s181_s9, 4  ;;  %s26_s12 = sshll.u32 %s182_s11, 4  ;;  %s17_s10 = int_to_ptr.vmem [resolvable:$true] %s16_s10  ;;  %s27_s12 = int_to_ptr.vmem [resolvable:$true] %s26_s12 }
   0x4   :  { %s109_s15 = scalar_lea.hbm %s240_s0, 64 }
   0x5   :  { %p110_p0 = scmp.ne.s32.totalorder %s240_s0, %s109_s15  ;;  %p113_p1 = scmp.lt.u32.totalorder %s109_s15, %s240_s0 }
   0x7   :  { %p115_p2 = pnand %p113_p1, %p110_p0 }
   0x9   :  { %118 = shalt.err (!%p115_p2)
}
   0xa   :  { %s119_s20 = scalar_lea.vmem %s17_s10, 64  ;;  %p124_p4 = scmp.lt.s32.totalorder %s17_s10, %s17_s10 }
   0xb   :  { %p120_p3 = scmp.ne.s32.totalorder %s17_s10, %s119_s20  ;;  %p125_p5 = scmp.lt.s32.totalorder %s119_s20, %s119_s20 }
   0xd   :  { %p126_p6 = por %p125_p5, %p124_p4 }
   0xf   :  { %p127_p7 = pnand %p126_p6, %p120_p3 }
  0x11   :  { %130 = shalt.err (!%p127_p7)
}
  0x12   :  { %19 = dma.hbm_to_vmem [thread:$0]  %s240_s0, 64, %s17_s10, [#allocation4]  }
  0x13   :  { %s131_s25 = scalar_lea.hbm %s241_s1, 64 }
  0x14   :  { %p132_p8 = scmp.ne.s32.totalorder %s241_s1, %s131_s25  ;;  %p135_p9 = scmp.lt.u32.totalorder %s131_s25, %s241_s1 }
  0x16   :  { %p137_p10 = pnand %p135_p9, %p132_p8 }
  0x18   :  { %140 = shalt.err (!%p137_p10)
}
  0x19   :  { %s141_s30 = scalar_lea.vmem %s27_s12, 64  ;;  %p146_p12 = scmp.lt.s32.totalorder %s27_s12, %s27_s12 }
  0x1a   :  { %p142_p11 = scmp.ne.s32.totalorder %s27_s12, %s141_s30  ;;  %p147_p13 = scmp.lt.s32.totalorder %s141_s30, %s141_s30 }
  0x1c   :  { %p148_p0 = por %p147_p13, %p146_p12 }
  0x1e   :  { %p149_p1 = pnand %p148_p0, %p142_p11 }
  0x20   :  { %152 = shalt.err (!%p149_p1)
}
  0x21   :  { %29 = dma.hbm_to_vmem [thread:$0]  %s241_s1, 64, %s27_s12, [#allocation7]  }
  0x22   :  { %175 = dma.done.wait [#allocation4], 64  }
  0x23   :  { %176 = vsyncadd [#allocation4], 4294967232 }
  0x24   :  { %177 = dma.done.wait [#allocation7], 64  }
  0x25   :  { %178 = vsyncadd [#allocation7], 4294967232  ;;  %v183_v0 = vmov 0.0   ;;  %v36_v1 = vld [vmem:[#allocation6] sm:$0xf]  ;;  %vm40_vm0 = vcmask 76800   ;;  %v43_v11 = vlaneseq }
  0x26   :  { %39 = vst [vmem:[#allocation2] sm:$0xf] %v183_v0  ;;  %v37_v2 = vld [vmem:[#allocation3] sm:$0xf]  ;;  %s184_s4 = smov 1   ;;  %s185_s5 = smov 2  }
  0x27   :  { %v38_v3 = vsub.f32 %v36_v1, %v37_v2  ;;  %s186_s1 = smov 4   ;;  %s187_s6 = smov 8   ;;  %v44_v12 = vand.u32 127, %v43_v11  ;;  %vm62_vm2 = vcmask 1043456   ;;  %vm81_vm4 = vcmask 0  }
  0x28   :  { %s188_s7 = smov [#allocation8]  }
  0x29   :  { %41 = vst.msk [vmem:[#allocation2] sm:$0xf] %vm40_vm0, %v38_v3  ;;  %vm58_vm1 = vcmp.lt.s32.totalorder %v44_v12, 10  ;;  %s89_s8 = sshll.u32 %s188_s7, 4  ;;  %s90_s8 = int_to_ptr.vmem [resolvable:$true] %s89_s8 }
  0x2a   :  { %s153_s9 = scalar_lea.vmem %s90_s8, 16  ;;  %s157_s10 = scalar_lea.vmem %s90_s8, 32 }
  0x2b   :  { %p154_p2 = scmp.ne.s32.totalorder %s90_s8, %s153_s9  ;;  %p158_p3 = scmp.lt.s32.totalorder %s90_s8, %s90_s8 }
  0x2c   :  { %p159_p4 = scmp.lt.s32.totalorder %s157_s10, %s153_s9 }
  0x2e   :  { %p160_p5 = por %p159_p4, %p158_p3 }
  0x30   :  { %v42_v4 = vld [vmem:[#allocation2] sm:$0xf]  ;;  %p161_p6 = pnand %p160_p5, %p154_p2 }
  0x31   :  { %45 = vrot.lane.b32.xlu0 %v42_v4, %s184_s4 }
  0xa3   :  { %v46_v5 = vpop.permute.xlu0 %45 }
  0xa4   :  { %v47_v6 = vadd.f32 %v46_v5, %v42_v4 }
  0xa6   :  { %48 = vrot.lane.b32.xlu0 %v47_v6, %s185_s5 }
 0x118   :  { %v49_v7 = vpop.permute.xlu0 %48 }
 0x119   :  { %v50_v8 = vadd.f32 %v49_v7, %v47_v6 }
 0x11b   :  { %51 = vrot.lane.b32.xlu1 %v50_v8, %s186_s1 }
 0x18d   :  { %v52_v9 = vpop.permute.xlu1 %51 }
 0x18e   :  { %v53_v10 = vadd.f32 %v52_v9, %v50_v8 }
 0x190   :  { %54 = vrot.lane.b32.xlu1 %v53_v10, %s187_s6 }
 0x202   :  { %v55_v13 = vpop.permute.xlu1 %54 }
 0x203   :  { %v56_v14 = vadd.f32 %v55_v13, %v53_v10 }
 0x205   :  { %v57_v15 = vmul.f32 %v56_v14, %v56_v14 }
 0x207   :  { %v61_v16 = vsel %vm58_vm1, %v57_v15, 0.0 }
 0x208   :  { %v63_v17 = vsel %vm62_vm2, %v61_v16, 0.0 }
 0x209   :  { %64 = vadd.xlane.f32.xlu0 %v63_v17 }
 0x296   :  { %v65_v18 = vpop.xlane.xlu0 %64 }
 0x297   :  { %v66_v19 = vsel %vm62_vm2, %v65_v18, 0.0 }
 0x298   :  { %v67_v20 = vrot.slane %v66_v19, 4 }
 0x29a   :  { %v68_v21 = vadd.f32 %v67_v20, %v66_v19 }
 0x29c   :  { %v69_v22 = vrot.slane %v68_v21, 2 }
 0x29e   :  { %v70_v23 = vadd.f32 %v69_v22, %v68_v21 }
 0x2a0   :  { %v71_v24 = vrot.slane %v70_v23, 1 }
 0x2a2   :  { %v72_v25 = vadd.f32 %v71_v24, %v70_v23 }
 0x2a4   :  { %v73_v26 = vmul.f32 0.025, %v72_v25 }
 0x2a6   :  { %107 = vrsqrt.f32 %v73_v26  ;;  %vm76_vm3 = vcmp.eq.f32.partialorder %v73_v26, inf  ;;  %v79_v29 = vand.u32 2147483648, %v73_v26  ;;  %vm78_vm5 = vcmp.eq.f32.partialorder %v73_v26, 0.0 }
 0x2b0   :  { %v108_v27 = vpop.eup %107 }
 0x2b1   :  { %v75_v28 = vmul.f32 %v108_v27, %v73_v26 }
 0x2b3   :  { %v77_v30 = vsel %vm76_vm3, %v73_v26, %v75_v28 }
 0x2b4   :  { %v80_v31 = vsel %vm78_vm5, %v79_v29, %v77_v30 }
 0x2b5   :  { %82 = vst.msk [vmem:[#allocation8] sm:$0x1] %vm81_vm4, %v80_v31 }
 0x2b6   :  { %164 = shalt.err (!%p161_p6)
}
 0x2b7   :  { %s165_s13 = scalar_lea.hbm %s242_s2, 16 }
 0x2b8   :  { %p166_p7 = scmp.ne.s32.totalorder %s242_s2, %s165_s13  ;;  %p169_p8 = scmp.lt.u32.totalorder %s165_s13, %s242_s2 }
 0x2ba   :  { %p171_p9 = pnand %p169_p8, %p166_p7 }
 0x2bc   :  { %174 = shalt.err (!%p171_p9)
}
 0x2bd   :  { %92 = dma.vmem_to_hbm [thread:$0]  %s90_s8, 16, %s242_s2, [#allocation5]  }
 0x2be   :  { %179 = dma.done.wait [#allocation5], 16  }
 0x2bf   :  { %180 = vsyncadd [#allocation5], 4294967280 }
 0x2c0   :  { %96 = vsyncpa [#allocation4], 1 }
 0x2c1   :  { %97 = vsyncpa [#allocation7], 1 }
 0x2c2   :  { %98 = vsyncpa [#allocation5], 1 }

</bundles_post_ra>
